<compile_context>
chip_gen: v5e
topology: v5e:2x2
jax: 0.10.0
libtpu: 0.0.40
codegen_flags: <defaults>
</compile_context>

<pallas_src>
import jax
import jax.numpy as jnp
from jax.experimental import pallas as pl
from jax.experimental.pallas import tpu as pltpu


def _round_up(n, m):
    return ((n + m - 1) // m) * m


def _mlp_kernel(x_ref, w1_ref, b1_ref, w2_ref, b2_ref, w3_ref, b3_ref, o_ref):
    # Layer 1: Linear(384 -> 128) + ReLU.
    # x streams from HBM as f32 (no extra wrapper astype pass); cast to bf16 in
    # VMEM for the bf16 MXU path, accumulate in f32.
    x_bf = x_ref[...].astype(jnp.bfloat16)
    h1 = jnp.dot(x_bf, w1_ref[...], preferred_element_type=jnp.float32)
    h1 = jnp.maximum(h1 + b1_ref[...], 0.0)

    # Layer 2: Linear(128 -> 64) + ReLU.
    h2 = jnp.dot(h1.astype(jnp.bfloat16), w2_ref[...],
                 preferred_element_type=jnp.float32)
    h2 = jnp.maximum(h2 + b2_ref[...], 0.0)

    # Layer 3: Linear(64 -> 1) + Sigmoid, done lane-dense:
    # transpose h2 to (H2, tile_b) on the (otherwise idle) XLU, multiply by the
    # (H2, 1) weight column on the VPU and sublane-reduce to (1, tile_b).
    # Bias add + sigmoid then run on tile_b/128 dense vregs, and the store is
    # an unmasked lane-dense vst into the (1, tile_b) output block.
    h2_t = h2.T                                            # (H2, tile_b)
    logits = jnp.sum(h2_t * w3_ref[...], axis=0, keepdims=True) + b3_ref[0]
    o_ref[...] = jax.nn.sigmoid(logits).astype(o_ref.dtype)


def risk_classifier_forward(x, params, *, block_b=4096):
    """Fused MLP forward (eval mode). x: (B, input_dim) f32 -> (B, 1) f32."""
    w1, b1, w2, b2, w3, b3 = params
    B, D = x.shape
    H1 = w1.shape[1]
    H2 = w2.shape[1]

    # Batch tile: multiple of 256, capped at block_b. For B > 256 also cap at
    # ceil(B/2) (rounded to 256) so there are always >= 2 grid steps and the
    # "parallel" axis can shard across v7x's two TensorCores.
    eff_b = min(block_b, _round_up(B, 256))
    if B > 256:
        eff_b = min(eff_b, _round_up(-(-B // 2), 256))
    num_tiles = pl.cdiv(B, eff_b)

    # Weights in bf16 (tiny, resident after first fetch); biases and the final
    # column / scalar stay f32.
    w1_bf = w1.astype(jnp.bfloat16)
    w2_bf = w2.astype(jnp.bfloat16)
    b1_f = b1.reshape(1, H1).astype(jnp.float32)
    b2_f = b2.reshape(1, H2).astype(jnp.float32)
    w3_col = w3.reshape(H2, 1).astype(jnp.float32)    # (64, 1) column for VPU
    b3_s = b3.reshape((1,)).astype(jnp.float32)       # SMEM scalar

    flops = 2 * B * (D * H1 + H1 * H2 + H2)
    bytes_accessed = (B * (D * 4 + 4)
                      + (D * H1 + H1 * H2) * 2
                      + (H1 + H2 + 1) * 4)

    out = pl.pallas_call(
        _mlp_kernel,
        # Lane-dense output: one (1, eff_b) row per batch tile; reshaped and
        # sliced to (B, 1) in the wrapper (contiguous, cheap). Ragged-tail
        # garbage rows are never observable.
        out_shape=jax.ShapeDtypeStruct((num_tiles, eff_b), jnp.float32),
        grid=(num_tiles,),
        in_specs=[
            # The only large HBM stream: a batch tile of f32 activations.
            # The tail block (B % eff_b != 0) is a Pallas partial block.
            pl.BlockSpec((eff_b, D), lambda i: (i, 0)),
            # Weights / biases: small, constant index -> fetched once, resident.
            pl.BlockSpec((D, H1), lambda i: (0, 0)),
            pl.BlockSpec((1, H1), lambda i: (0, 0)),
            pl.BlockSpec((H1, H2), lambda i: (0, 0)),
            pl.BlockSpec((1, H2), lambda i: (0, 0)),
            pl.BlockSpec((H2, 1), lambda i: (0, 0)),
            # Final bias as a scalar in SMEM.
            pl.BlockSpec(memory_space=pltpu.MemorySpace.SMEM),
        ],
        out_specs=pl.BlockSpec((1, eff_b), lambda i: (i, 0)),
        compiler_params=pltpu.CompilerParams(
            dimension_semantics=("parallel",),
            vmem_limit_bytes=48 * 1024 * 1024,
        ),
        cost_estimate=pl.CostEstimate(
            flops=flops, bytes_accessed=bytes_accessed, transcendentals=B),
    )(x, w1_bf, b1_f, w2_bf, b2_f, w3_col, b3_s)

    return out.reshape(num_tiles * eff_b, 1)[:B]


def init_params(key, input_dim=384, hidden_dim=128):
    """Deterministic parameter init (uniform, PyTorch-Linear-style bounds)."""
    h2 = hidden_dim // 2
    ks = jax.random.split(key, 6)

    def lin(kw, kb, fan_in, fan_out):
        bound = 1.0 / jnp.sqrt(fan_in)
        w = jax.random.uniform(kw, (fan_in, fan_out), jnp.float32, -bound, bound)
        b = jax.random.uniform(kb, (1, fan_out), jnp.float32, -bound, bound)
        return w, b

    w1, b1 = lin(ks[0], ks[1], input_dim, hidden_dim)
    w2, b2 = lin(ks[2], ks[3], hidden_dim, h2)
    w3, b3 = lin(ks[4], ks[5], h2, 1)
    return (w1, b1, w2, b2, w3, b3)


def _reference(x, params):
    w1, b1, w2, b2, w3, b3 = params
    h1 = jnp.maximum(x @ w1 + b1, 0.0)
    h2 = jnp.maximum(h1 @ w2 + b2, 0.0)
    return jax.nn.sigmoid(h2 @ w3 + b3)


if __name__ == "__main__":
    input_dim, hidden_dim = 384, 128
    key = jax.random.PRNGKey(0)
    kx, kx2, kp = jax.random.split(key, 3)
    params = init_params(kp, input_dim, hidden_dim)

    # Case 1: small batch (64) -> single partial tile (exercises ragged tail).
    x_small = jax.random.normal(kx, (64, input_dim), dtype=jnp.float32)
    out_small = jax.block_until_ready(risk_classifier_forward(x_small, params))
    ref_small = _reference(x_small, params)
    assert out_small.shape == (64, 1)
    # bf16 MXU path with f32 accumulation: loosened tolerance.
    assert jnp.allclose(out_small, ref_small, atol=2e-2, rtol=0.0), (
        float(jnp.max(jnp.abs(out_small - ref_small))))

    # Case 2: batch 600 -> 2 grid steps (megacore path) with a partial tail.
    x_big = jax.random.normal(kx2, (600, input_dim), dtype=jnp.float32)
    out_big = jax.block_until_ready(risk_classifier_forward(x_big, params))
    ref_big = _reference(x_big, params)
    assert out_big.shape == (600, 1)
    assert jnp.allclose(out_big, ref_big, atol=2e-2, rtol=0.0), (
        float(jnp.max(jnp.abs(out_big - ref_big))))

    print("KERNEL_OK")
</pallas_src>

<mosaic_0001>
module attributes {stable_mosaic.version = 11 : i64} {
  func.func @_mlp_kernel(%arg0: i32, %arg1: memref<256x384xf32, #tpu.memory_space<vmem>>, %arg2: memref<384x128xbf16, #tpu.memory_space<vmem>>, %arg3: memref<1x128xf32, #tpu.memory_space<vmem>>, %arg4: memref<128x64xbf16, #tpu.memory_space<vmem>>, %arg5: memref<1x64xf32, #tpu.memory_space<vmem>>, %arg6: memref<64x1xf32, #tpu.memory_space<vmem>>, %arg7: memref<1xf32, #tpu.memory_space<smem>>, %arg8: memref<1x256xf32, #tpu.memory_space<vmem>>) attributes {dimension_semantics = [#tpu.dimension_semantics<parallel>], iteration_bounds = array<i64: 1>, scalar_prefetch = 0 : i64, scratch_operands = 0 : i64, tpu.core_type = #tpu.core_type<tc>, window_params = [{transform_indices = @transform_0, window_bounds = array<i64: 256, 384>}, {pipeline_mode = #tpu.pipeline_mode<synchronous>, transform_indices = @transform_1, window_bounds = array<i64: 384, 128>}, {pipeline_mode = #tpu.pipeline_mode<synchronous>, transform_indices = @transform_2, window_bounds = array<i64: 1, 128>}, {pipeline_mode = #tpu.pipeline_mode<synchronous>, transform_indices = @transform_3, window_bounds = array<i64: 128, 64>}, {pipeline_mode = #tpu.pipeline_mode<synchronous>, transform_indices = @transform_4, window_bounds = array<i64: 1, 64>}, {pipeline_mode = #tpu.pipeline_mode<synchronous>, transform_indices = @transform_5, window_bounds = array<i64: 64, 1>}, {transform_indices = @transform_6, window_bounds = array<i64: 1>}, {transform_indices = @transform_7, window_bounds = array<i64: 1, 256>}]} {
    %c0 = arith.constant 0 : index
    %c0_0 = arith.constant 0 : index
    %0 = vector.load %arg1[%c0, %c0_0] : memref<256x384xf32, #tpu.memory_space<vmem>>, vector<256x384xf32>
    %1 = arith.truncf %0 : vector<256x384xf32> to vector<256x384xbf16>
    %c0_1 = arith.constant 0 : index
    %c0_2 = arith.constant 0 : index
    %2 = vector.load %arg2[%c0_1, %c0_2] : memref<384x128xbf16, #tpu.memory_space<vmem>>, vector<384x128xbf16>
    %cst = arith.constant dense<0.000000e+00> : vector<256x128xf32>
    %3 = tpu.matmul %1, %2, %cst {dimension_numbers = #tpu.dot_dimension_numbers<[1], [0], [0], [1], [0, 0, 1, 1], [], []>} : vector<256x384xbf16>, vector<384x128xbf16>, vector<256x128xf32> -> vector<256x128xf32>
    %c0_3 = arith.constant 0 : index
    %c0_4 = arith.constant 0 : index
    %4 = vector.load %arg3[%c0_3, %c0_4] : memref<1x128xf32, #tpu.memory_space<vmem>>, vector<1x128xf32>
    %5 = vector.broadcast %4 : vector<1x128xf32> to vector<256x128xf32>
    %6 = arith.addf %3, %5 : vector<256x128xf32>
    %cst_5 = arith.constant 0.000000e+00 : f32
    %7 = vector.broadcast %cst_5 : f32 to vector<256x128xf32>
    %8 = arith.maximumf %6, %7 : vector<256x128xf32>
    %9 = arith.truncf %8 : vector<256x128xf32> to vector<256x128xbf16>
    %c0_6 = arith.constant 0 : index
    %c0_7 = arith.constant 0 : index
    %10 = vector.load %arg4[%c0_6, %c0_7] : memref<128x64xbf16, #tpu.memory_space<vmem>>, vector<128x64xbf16>
    %cst_8 = arith.constant dense<0.000000e+00> : vector<256x64xf32>
    %11 = tpu.matmul %9, %10, %cst_8 {dimension_numbers = #tpu.dot_dimension_numbers<[1], [0], [0], [1], [0, 0, 1, 1], [], []>} : vector<256x128xbf16>, vector<128x64xbf16>, vector<256x64xf32> -> vector<256x64xf32>
    %c0_9 = arith.constant 0 : index
    %c0_10 = arith.constant 0 : index
    %12 = vector.load %arg5[%c0_9, %c0_10] : memref<1x64xf32, #tpu.memory_space<vmem>>, vector<1x64xf32>
    %13 = vector.broadcast %12 : vector<1x64xf32> to vector<256x64xf32>
    %14 = arith.addf %11, %13 : vector<256x64xf32>
    %cst_11 = arith.constant 0.000000e+00 : f32
    %15 = vector.broadcast %cst_11 : f32 to vector<256x64xf32>
    %16 = arith.maximumf %14, %15 : vector<256x64xf32>
    %17 = tpu.transpose %16, [1, 0] : vector<256x64xf32> -> vector<64x256xf32>
    %c0_12 = arith.constant 0 : index
    %c0_13 = arith.constant 0 : index
    %18 = vector.load %arg6[%c0_12, %c0_13] : memref<64x1xf32, #tpu.memory_space<vmem>>, vector<64x1xf32>
    %19 = vector.broadcast %18 : vector<64x1xf32> to vector<64x256xf32>
    %20 = arith.mulf %17, %19 : vector<64x256xf32>
    %cst_14 = arith.constant dense<0.000000e+00> : vector<256xf32>
    %21 = vector.multi_reduction <add>, %20, %cst_14 [0] : vector<64x256xf32> to vector<256xf32>
    %22 = vector.shape_cast %21 : vector<256xf32> to vector<1x256xf32>
    %c0_15 = arith.constant 0 : index
    %23 = memref.load %arg7[%c0_15] : memref<1xf32, #tpu.memory_space<smem>>
    %24 = vector.broadcast %23 : f32 to vector<1x256xf32>
    %25 = arith.addf %22, %24 : vector<1x256xf32>
    %26 = arith.negf %25 : vector<1x256xf32>
    %27 = math.exp %26 : vector<1x256xf32>
    %cst_16 = arith.constant 1.000000e+00 : f32
    %28 = vector.broadcast %cst_16 : f32 to vector<1x256xf32>
    %29 = arith.addf %28, %27 : vector<1x256xf32>
    %30 = arith.divf %28, %29 : vector<1x256xf32>
    %c0_17 = arith.constant 0 : index
    %c0_18 = arith.constant 0 : index
    %31 = vector.load %arg8[%c0_17, %c0_18] : memref<1x256xf32, #tpu.memory_space<vmem>>, vector<1x256xf32>
    tpu.vector_store %arg8[%c0_17, %c0_18], %30 {strides = array<i32>} : memref<1x256xf32, #tpu.memory_space<vmem>>, vector<1x256xf32>,
    return
  }
  func.func @transform_0(%arg0: i32) -> (i32, i32) {
    %c0_i32 = arith.constant 0 : i32
    %c0_i32_0 = arith.constant 0 : i32
    return %arg0, %c0_i32 : i32, i32
  }
  func.func @transform_1(%arg0: i32) -> (i32, i32) {
    %c0_i32 = arith.constant 0 : i32
    %c0_i32_0 = arith.constant 0 : i32
    %c0_i32_1 = arith.constant 0 : i32
    return %c0_i32, %c0_i32_0 : i32, i32
  }
  func.func @transform_2(%arg0: i32) -> (i32, i32) {
    %c0_i32 = arith.constant 0 : i32
    %c0_i32_0 = arith.constant 0 : i32
    %c0_i32_1 = arith.constant 0 : i32
    return %c0_i32, %c0_i32_0 : i32, i32
  }
  func.func @transform_3(%arg0: i32) -> (i32, i32) {
    %c0_i32 = arith.constant 0 : i32
    %c0_i32_0 = arith.constant 0 : i32
    %c0_i32_1 = arith.constant 0 : i32
    return %c0_i32, %c0_i32_0 : i32, i32
  }
  func.func @transform_4(%arg0: i32) -> (i32, i32) {
    %c0_i32 = arith.constant 0 : i32
    %c0_i32_0 = arith.constant 0 : i32
    %c0_i32_1 = arith.constant 0 : i32
    return %c0_i32, %c0_i32_0 : i32, i32
  }
  func.func @transform_5(%arg0: i32) -> (i32, i32) {
    %c0_i32 = arith.constant 0 : i32
    %c0_i32_0 = arith.constant 0 : i32
    %c0_i32_1 = arith.constant 0 : i32
    return %c0_i32, %c0_i32_0 : i32, i32
  }
  func.func @transform_6(%arg0: i32) -> i32 {
    %c0_i32 = arith.constant 0 : i32
    %c0_i32_0 = arith.constant 0 : i32
    return %c0_i32 : i32
  }
  func.func @transform_7(%arg0: i32) -> (i32, i32) {
    %c0_i32 = arith.constant 0 : i32
    %c0_i32_0 = arith.constant 0 : i32
    return %arg0, %c0_i32 : i32, i32
  }
}

</mosaic_0001>

<bundles_post_ra>
// kernel: tpu_custom_call.1
= control target key start
LH: loop header
LB: loop body
LE: loop exit
PB: predicated region body
PF: predicated region fallthrough
CT: control target
= control target key end

     0   :  { %13 = vsyncpa [#allocation4], 0  ;;  %s1579_s0 = inlined_call_operand.hbm [shape: f32[64,384], index: 0, kind: input, shape index: {}]   ;;  %s1580_s1 = inlined_call_operand.hbm [shape: bf16[384,128], index: 1, kind: input, shape index: {}]   ;;  %s1581_s2 = inlined_call_operand.vmem [shape: f32[1,128], index: 2, kind: input, shape index: {}]   ;;  %s1582_s3 = inlined_call_operand.vmem [shape: bf16[128,64], index: 3, kind: input, shape index: {}]   ;;  %s1583_s4 = inlined_call_operand.vmem [shape: f32[1,64], index: 4, kind: input, shape index: {}]   ;;  %s1584_s5 = inlined_call_operand.vmem [shape: f32[64,1], index: 5, kind: input, shape index: {}]   ;;  %s1585_s6 = inlined_call_operand.<no memory space> [shape: f32[1], index: 6, kind: input, shape index: {}]   ;;  %s1586_s7 = inlined_call_operand.hbm [shape: f32[1,256], index: 7, kind: output, shape index: {}]  }
   0x1   :  { %14 = vsyncpa [#allocation7], 0 }
   0x2   :  { %15 = vsyncpa [#allocation5], 0 }
   0x3   :  { %19 = vsyncadd [#allocation4], 9216  ;;  %s20_s26 = sshll.u32 %s1579_s0, 4  ;;  %s1389_s27 = smov [#allocation3]   ;;  %s21_s26 = int_to_ptr.hbm [resolvable:$true] %s20_s26 }
   0x4   :  { %s22_s28 = sshll.u32 %s1389_s27, 4  ;;  %s33_s8 = sshll.u32 %s1580_s1, 4  ;;  %s23_s28 = int_to_ptr.vmem [resolvable:$true] %s22_s28  ;;  %s34_s8 = int_to_ptr.hbm [resolvable:$true] %s33_s8 }
   0x5   :  { %s1390_s9 = smov 384   ;;  %s1391_s10 = smov 24  }
   0x6   :  { %28 = dma.hbm_to_vmem [thread:$0]  %s21_s26, 3072, %s23_s28, [#allocation4], %s1390_s9, %s1390_s9, %s1391_s10  }
   0x7   :  { %s1392_s11 = smov [#allocation6]   ;;  %s1393_s13 = smov 64  }
   0x8   :  { %s35_s12 = sshll.u32 %s1392_s11, 4  ;;  %s1394_s14 = smov 4   ;;  %s36_s12 = int_to_ptr.vmem [resolvable:$true] %s35_s12 }
   0x9   :  { %41 = dma.hbm_to_vmem [thread:$0]  %s34_s8, 3072, %s36_s12, [#allocation7], %s1393_s13, %s1393_s13, %s1394_s14  }
   0xa   :  { %1383 = dma.done.wait [#allocation4], 12288  }
   0xb   :  { %1384 = vsyncadd [#allocation4], 4294955008 }
   0xc   :  { %1385 = dma.done.wait [#allocation7], 3072  }
   0xd   :  { %1386 = vsyncadd [#allocation7], 4294964224  ;;  %v1266_v0 = vld [vmem:[#allocation6 + $0x38] sm:$0xff]  ;;  %v1265_v3 = vld [vmem:[#allocation6 + $0x30] sm:$0xff]  ;;  %s1118_s25 = sshll.u32 %s1586_s7, 4  ;;  %vm1103_vm8 = vcmask 1040384   ;;  %s1119_s25 = int_to_ptr.hbm [resolvable:$true] %s1118_s25 }
   0xe   :  { %v1274_v1 = vld [vmem:[#allocation6 + $0x78] sm:$0xff]  ;;  %400 = vmatpush.bf16.msra.mxu0 %v1266_v0  ;;  %v1273_v4 = vld [vmem:[#allocation6 + $0x70] sm:$0xff]  ;;  %v1264_v6 = vld [vmem:[#allocation6 + $0x28] sm:$0xff] }
   0xf   :  { %v1282_v2 = vld [vmem:[#allocation6 + $0xb8] sm:$0xff]  ;;  %489 = vmatpush.bf16.msra.mxu1 %v1274_v1  ;;  %v1281_v5 = vld [vmem:[#allocation6 + $0xb0] sm:$0xff]  ;;  %v1272_v7 = vld [vmem:[#allocation6 + $0x68] sm:$0xff] }
  0x10   :  { %578 = vmatpush.bf16.msra.mxu2 %v1282_v2  ;;  %v1280_v8 = vld [vmem:[#allocation6 + $0xa8] sm:$0xff]  ;;  %v1263_v9 = vld [vmem:[#allocation6 + $0x20] sm:$0xff]  ;;  %v1262_v12 = vld [vmem:[#allocation6 + $0x18] sm:$0xff] }
  0x11   :  { %v1271_v10 = vld [vmem:[#allocation6 + $0x60] sm:$0xff]  ;;  %v1270_v13 = vld [vmem:[#allocation6 + $0x58] sm:$0xff]  ;;  %v1261_v15 = vld [vmem:[#allocation6 + $0x10] sm:$0xff] }
  0x12   :  { %401 = vmatpush.bf16.msra.mxu0 %v1265_v3  ;;  %v1279_v11 = vld [vmem:[#allocation6 + $0xa0] sm:$0xff]  ;;  %v1278_v14 = vld [vmem:[#allocation6 + $0x98] sm:$0xff]  ;;  %v1269_v16 = vld [vmem:[#allocation6 + $0x50] sm:$0xff] }
  0x13   :  { %490 = vmatpush.bf16.msra.mxu1 %v1273_v4  ;;  %v1277_v17 = vld [vmem:[#allocation6 + $0x90] sm:$0xff]  ;;  %v1260_v18 = vld [vmem:[#allocation6 + $0x8] sm:$0xff]  ;;  %v1259_v21 = vld [vmem:[#allocation6] sm:$0xff] }
  0x14   :  { %579 = vmatpush.bf16.msra.mxu2 %v1281_v5  ;;  %v1268_v19 = vld [vmem:[#allocation6 + $0x48] sm:$0xff]  ;;  %v1267_v22 = vld [vmem:[#allocation6 + $0x40] sm:$0xff]  ;;  %v63_v24 = vld [vmem:[#allocation3 + $0x18] sm:$0xff] }
  0x15   :  { %v1276_v20 = vld [vmem:[#allocation6 + $0x88] sm:$0xff]  ;;  %v60_v23 = vld [vmem:[#allocation3] sm:$0xff]  ;;  %v62_v28 = vld [vmem:[#allocation3 + $0x10] sm:$0xff] }
  0x16   :  { %402 = vmatpush.bf16.msra.mxu0 %v1264_v6  ;;  %v61_v25 = vld [vmem:[#allocation3 + $0x8] sm:$0xff]  ;;  %v64_v26 = vld [vmem:[#allocation3 + $0x20] sm:$0xff]  ;;  %v156_v30 = vpack.c.bf16 %v63_v24, %v60_v23  ;;  %v66_v33 = vld [vmem:[#allocation3 + $0x30] sm:$0xff] }
  0x17   :  { %491 = vmatpush.bf16.msra.mxu1 %v1272_v7  ;;  %v1275_v27 = vld [vmem:[#allocation6 + $0x80] sm:$0xff]  ;;  %v65_v29 = vld [vmem:[#allocation3 + $0x28] sm:$0xff]  ;;  %v157_v31 = vpack.c.bf16 %v64_v26, %v61_v25  ;;  %v67_v35 = vld [vmem:[#allocation3 + $0x38] sm:$0xff] }
  0x18   :  { %580 = vmatpush.bf16.msra.mxu2 %v1280_v8  ;;  %v158_v32 = vpack.c.bf16 %v65_v29, %v62_v28  ;;  %v69_v34 = vld [vmem:[#allocation3 + $0x48] sm:$0xff]  ;;  %v70_v36 = vld [vmem:[#allocation3 + $0x50] sm:$0xff]  ;;  %v68_v37 = vld [vmem:[#allocation3 + $0x40] sm:$0xff] }
  0x19   :  { %v71_v38 = vld [vmem:[#allocation3 + $0x58] sm:$0xff]  ;;  %v159_v39 = vpack.c.bf16 %v69_v34, %v66_v33  ;;  %v160_v40 = vpack.c.bf16 %v70_v36, %v67_v35  ;;  %v72_v42 = vld [vmem:[#allocation3 + $0x60] sm:$0xff]  ;;  %v73_v44 = vld [vmem:[#allocation3 + $0x68] sm:$0xff] }
  0x1a   :  { %403 = vmatpush.bf16.msra.mxu0 %v1263_v9  ;;  %v161_v41 = vpack.c.bf16 %v71_v38, %v68_v37  ;;  %v75_v43 = vld [vmem:[#allocation3 + $0x78] sm:$0xff]  ;;  %v76_v45 = vld [vmem:[#allocation3 + $0x80] sm:$0xff]  ;;  %v74_v46 = vld [vmem:[#allocation3 + $0x70] sm:$0xff] }
  0x1b   :  { %492 = vmatpush.bf16.msra.mxu1 %v1271_v10  ;;  %v77_v47 = vld [vmem:[#allocation3 + $0x88] sm:$0xff]  ;;  %v162_v48 = vpack.c.bf16 %v75_v43, %v72_v42  ;;  %v163_v49 = vpack.c.bf16 %v76_v45, %v73_v44  ;;  %v78_v51 = vld [vmem:[#allocation3 + $0x90] sm:$0xff]  ;;  %v79_v53 = vld [vmem:[#allocation3 + $0x98] sm:$0xff] }
  0x1c   :  { %581 = vmatpush.bf16.msra.mxu2 %v1279_v11  ;;  %v164_v50 = vpack.c.bf16 %v77_v47, %v74_v46  ;;  %v81_v52 = vld [vmem:[#allocation3 + $0xa8] sm:$0xff]  ;;  %v82_v54 = vld [vmem:[#allocation3 + $0xb0] sm:$0xff]  ;;  %v80_v55 = vld [vmem:[#allocation3 + $0xa0] sm:$0xff] }
  0x1d   :  { %v83_v56 = vld [vmem:[#allocation3 + $0xb8] sm:$0xff]  ;;  %v165_v57 = vpack.c.bf16 %v81_v52, %v78_v51  ;;  %v166_v58 = vpack.c.bf16 %v82_v54, %v79_v53  ;;  %v84_v60 = vld [vmem:[#allocation3 + $0xc0] sm:$0xff]  ;;  %v85_v62 = vld [vmem:[#allocation3 + $0xc8] sm:$0xff] }
  0x1e   :  { %404 = vmatpush.bf16.msra.mxu0 %v1262_v12  ;;  %v167_v59 = vpack.c.bf16 %v83_v56, %v80_v55  ;;  %v87_v61 = vld [vmem:[#allocation3 + $0xd8] sm:$0xff]  ;;  %v88_v63 = vld [vmem:[#allocation3 + $0xe0] sm:$0xff]  ;;  %v86_v0 = vld [vmem:[#allocation3 + $0xd0] sm:$0xff] }
  0x1f   :  { %493 = vmatpush.bf16.msra.mxu1 %v1270_v13  ;;  %v89_v1 = vld [vmem:[#allocation3 + $0xe8] sm:$0xff]  ;;  %v168_v2 = vpack.c.bf16 %v87_v61, %v84_v60  ;;  %v169_v3 = vpack.c.bf16 %v88_v63, %v85_v62  ;;  %v90_v5 = vld [vmem:[#allocation3 + $0xf0] sm:$0xff]  ;;  %v91_v7 = vld [vmem:[#allocation3 + $0xf8] sm:$0xff] }
  0x20   :  { %582 = vmatpush.bf16.msra.mxu2 %v1278_v14  ;;  %v170_v4 = vpack.c.bf16 %v89_v1, %v86_v0  ;;  %v93_v6 = vld [vmem:[#allocation3 + $0x108] sm:$0xff]  ;;  %v94_v8 = vld [vmem:[#allocation3 + $0x110] sm:$0xff]  ;;  %v92_v9 = vld [vmem:[#allocation3 + $0x100] sm:$0xff] }
  0x21   :  { %v95_v10 = vld [vmem:[#allocation3 + $0x118] sm:$0xff]  ;;  %v171_v11 = vpack.c.bf16 %v93_v6, %v90_v5  ;;  %v172_v12 = vpack.c.bf16 %v94_v8, %v91_v7  ;;  %v1287_v26 = vld [vmem:[%s1582_s3 + $0x20] sm:$0xff]  ;;  %v1285_v28 = vld [vmem:[%s1582_s3 + $0x10] sm:$0xff] }
  0x22   :  { %405 = vmatpush.bf16.msra.mxu0 %v1261_v15  ;;  %v173_v13 = vpack.c.bf16 %v95_v10, %v92_v9  ;;  %v1290_v14 = vld [vmem:[%s1582_s3 + $0x38] sm:$0xff]  ;;  %v1289_v15 = vld [vmem:[%s1582_s3 + $0x30] sm:$0xff]  ;;  %v104_v33 = vld [vmem:[#allocation3 + $0x160] sm:$0xff] }
  0x23   :  { %494 = vmatpush.bf16.msra.mxu1 %v1269_v16  ;;  %783 = vmatpush.bf16.msra.mxu3 %v1290_v14  ;;  %v1288_v16 = vld [vmem:[%s1582_s3 + $0x28] sm:$0xff]  ;;  %v102_v29 = vld [vmem:[#allocation3 + $0x150] sm:$0xff]  ;;  %v107_v34 = vld [vmem:[#allocation3 + $0x178] sm:$0xff] }
  0x24   :  { %583 = vmatpush.bf16.msra.mxu2 %v1277_v17  ;;  %v96_v17 = vld [vmem:[#allocation3 + $0x120] sm:$0xff]  ;;  %v1284_v35 = vld [vmem:[%s1582_s3 + $0x8] sm:$0xff]  ;;  %v179_v38 = vpack.c.bf16 %v107_v34, %v104_v33  ;;  %v110_v44 = vld [vmem:[#allocation3 + $0x190] sm:$0xff] }
  0x25   :  { %v109_v42 = vld [vmem:[#allocation3 + $0x188] sm:$0xff]  ;;  %v112_v43 = vld [vmem:[#allocation3 + $0x1a0] sm:$0xff]  ;;  %v115_v60 = vld [vmem:[#allocation3 + $0x1b8] sm:$0xff] }
  0x26   :  { %406 = vmatpush.bf16.msra.mxu0 %v1260_v18  ;;  %v99_v18 = vld [vmem:[#allocation3 + $0x138] sm:$0xff]  ;;  %v113_v45 = vld [vmem:[#allocation3 + $0x1a8] sm:$0xff]  ;;  %v181_v47 = vpack.c.bf16 %v112_v43, %v109_v42  ;;  %v1470_v51 = vld [vmem:[%s1581_s2] ss:$0 sm:$0xff] }
  0x27   :  { %495 = vmatpush.bf16.msra.mxu1 %v1268_v19  ;;  %784 = vmatpush.bf16.msra.mxu3 %v1289_v15  ;;  %v97_v19 = vld [vmem:[#allocation3 + $0x128] sm:$0xff]  ;;  %v174_v23 = vpack.c.bf16 %v99_v18, %v96_v17  ;;  %v118_v61 = vld [vmem:[#allocation3 + $0x1d0] sm:$0xff]  ;;  %v116_v62 = vld [vmem:[#allocation3 + $0x1c0] sm:$0xff] }
  0x28   :  { %584 = vmatpush.bf16.msra.mxu2 %v1276_v20  ;;  %v100_v20 = vld [vmem:[#allocation3 + $0x140] sm:$0xff]  ;;  %v119_v63 = vld [vmem:[#allocation3 + $0x1d8] sm:$0xff]  ;;  %v126_v42 = vld [vmem:[#allocation3 + $0x210] sm:$0xff] }
  0x29   :  { %v175_v24 = vpack.c.bf16 %v100_v20, %v97_v19  ;;  %v185_v8 = vpack.c.bf16 %v119_v63, %v116_v62  ;;  %v120_v18 = vld [vmem:[#allocation3 + $0x1e0] sm:$0xff]  ;;  %v123_v19 = vld [vmem:[#allocation3 + $0x1f8] sm:$0xff]  ;;  %v121_v20 = vld [vmem:[#allocation3 + $0x1e8] sm:$0xff] }
  0x2a   :  { %407 = vmatpush.bf16.msra.mxu0 %v1259_v21  ;;  %v98_v21 = vld [vmem:[#allocation3 + $0x130] sm:$0xff]  ;;  %v129_v43 = vld [vmem:[#allocation3 + $0x228] sm:$0xff] }
  0x2b   :  { %496 = vmatpush.bf16.msra.mxu1 %v1267_v22  ;;  %v101_v22 = vld [vmem:[#allocation3 + $0x148] sm:$0xff]  ;;  %785 = vmatpush.bf16.msra.mxu3 %v1288_v16 }
  0x2c   :  { %585 = vmatpush.bf16.msra.mxu2 %v1275_v27  ;;  %v176_v25 = vpack.c.bf16 %v101_v22, %v98_v21  ;;  %v1286_v27 = vld [vmem:[%s1582_s3 + $0x18] sm:$0xff]  ;;  %v124_v21 = vld [vmem:[#allocation3 + $0x200] sm:$0xff]  ;;  %v122_v22 = vld [vmem:[#allocation3 + $0x1f0] sm:$0xff] }
  0x2d   :  { %408 = vmatmul.bf16.vlgmr.msra.gmra.mxu0 %v156_v30  ;;  %v105_v30 = vld [vmem:[#allocation3 + $0x168] sm:$0xff] }
  0x2e   :  { %497 = vmatmul.bf16.vlgmr.msra.gmra.mxu1 %v157_v31  ;;  %v103_v31 = vld [vmem:[#allocation3 + $0x158] sm:$0xff]  ;;  %v177_v36 = vpack.c.bf16 %v105_v30, %v102_v29 }
  0x2f   :  { %586 = vmatmul.bf16.vlgmr.msra.gmra.mxu2 %v158_v32  ;;  %786 = vmatpush.bf16.msra.mxu3 %v1287_v26  ;;  %v106_v32 = vld [vmem:[#allocation3 + $0x170] sm:$0xff] }
  0x30   :  { %v178_v37 = vpack.c.bf16 %v106_v32, %v103_v31 }
  0x33   :  { %787 = vmatpush.bf16.msra.mxu3 %v1286_v27  ;;  %v186_v27 = vpack.c.bf16 %v123_v19, %v120_v18 }
  0x37   :  { %788 = vmatpush.bf16.msra.mxu3 %v1285_v28  ;;  %v187_v28 = vpack.c.bf16 %v124_v21, %v121_v20 }
  0x3b   :  { %789 = vmatpush.bf16.msra.mxu3 %v1284_v35 }
  0x3d   :  { %413 = vmatmul.bf16.gmra.mxu0 %v159_v39  ;;  %v1283_v39 = vld [vmem:[%s1582_s3] sm:$0xff] }
  0x3e   :  { %502 = vmatmul.bf16.gmra.mxu1 %v160_v40  ;;  %v108_v40 = vld [vmem:[#allocation3 + $0x180] sm:$0xff] }
  0x3f   :  { %591 = vmatmul.bf16.gmra.mxu2 %v161_v41  ;;  %790 = vmatpush.bf16.msra.mxu3 %v1283_v39  ;;  %v111_v41 = vld [vmem:[#allocation3 + $0x198] sm:$0xff] }
  0x40   :  { %v180_v46 = vpack.c.bf16 %v111_v41, %v108_v40 }
  0x4d   :  { %418 = vmatmul.bf16.gmra.mxu0 %v162_v48 }
  0x4e   :  { %507 = vmatmul.bf16.gmra.mxu1 %v163_v49 }
  0x4f   :  { %596 = vmatmul.bf16.gmra.mxu2 %v164_v50  ;;  %v182_v50 = vpack.c.bf16 %v113_v45, %v110_v44  ;;  %v127_v44 = vld [vmem:[#allocation3 + $0x218] sm:$0xff]  ;;  %v130_v45 = vld [vmem:[#allocation3 + $0x230] sm:$0xff] }
  0x5d   :  { %423 = vmatmul.bf16.gmra.mxu0 %v165_v57 }
  0x5e   :  { %512 = vmatmul.bf16.gmra.mxu1 %v166_v58  ;;  %v114_v58 = vld [vmem:[#allocation3 + $0x1b0] sm:$0xff] }
  0x5f   :  { %601 = vmatmul.bf16.gmra.mxu2 %v167_v59  ;;  %v117_v59 = vld [vmem:[#allocation3 + $0x1c8] sm:$0xff] }
  0x6d   :  { %428 = vmatmul.bf16.gmra.mxu0 %v168_v2 }
  0x6e   :  { %517 = vmatmul.bf16.gmra.mxu1 %v169_v3  ;;  %v183_v3 = vpack.c.bf16 %v117_v59, %v114_v58 }
  0x6f   :  { %606 = vmatmul.bf16.gmra.mxu2 %v170_v4  ;;  %v184_v4 = vpack.c.bf16 %v118_v61, %v115_v60 }
  0x7d   :  { %433 = vmatmul.bf16.gmra.mxu0 %v171_v11 }
  0x7e   :  { %522 = vmatmul.bf16.gmra.mxu1 %v172_v12 }
  0x7f   :  { %611 = vmatmul.bf16.gmra.mxu2 %v173_v13 }
  0x8d   :  { %438 = vmatmul.bf16.gmra.mxu0 %v174_v23  ;;  %v125_v23 = vld [vmem:[#allocation3 + $0x208] sm:$0xff] }
  0x8e   :  { %527 = vmatmul.bf16.gmra.mxu1 %v175_v24  ;;  %v188_v32 = vpack.c.bf16 %v125_v23, %v122_v22 }
  0x8f   :  { %616 = vmatmul.bf16.gmra.mxu2 %v176_v25 }
  0x9d   :  { %443 = vmatmul.bf16.gmra.mxu0 %v177_v36 }
  0x9e   :  { %532 = vmatmul.bf16.gmra.mxu1 %v178_v37 }
  0x9f   :  { %621 = vmatmul.bf16.gmra.mxu2 %v179_v38 }
  0xaa   :  { %v409_v48 = vpop.f32.mrf.mxu0 }
  0xab   :  { %v498_v49 = vpop.f32.mrf.mxu1  ;;  %v410_v52 = vadd.f32 %v1470_v51, %v409_v48 }
  0xad   :  { %448 = vmatmul.bf16.gmra.mxu0 %v180_v46  ;;  %v499_v56 = vadd.f32 %v498_v49, %v410_v52  ;;  %v128_v46 = vld [vmem:[#allocation3 + $0x220] sm:$0xff]  ;;  %v189_v52 = vpack.c.bf16 %v129_v43, %v126_v42 }
  0xae   :  { %537 = vmatmul.bf16.gmra.mxu1 %v181_v47  ;;  %v131_v47 = vld [vmem:[#allocation3 + $0x238] sm:$0xff] }
  0xaf   :  { %626 = vmatmul.bf16.gmra.mxu2 %v182_v50 }
  0xb2   :  { %v587_v53 = vpop.f32.mrf.mxu2  ;;  %v411_v54 = vpop.f32.mrf.mxu0 }
  0xb3   :  { %v500_v55 = vpop.f32.mrf.mxu1  ;;  %v412_v57 = vadd.f32 %v1470_v51, %v411_v54  ;;  %v588_v0 = vadd.f32 %v587_v53, %v499_v56  ;;  %v190_v53 = vpack.c.bf16 %v130_v45, %v127_v44 }
  0xb5   :  { %v501_v1 = vadd.f32 %v500_v55, %v412_v57  ;;  %v667_v9 = vmax.f32 %v588_v0, 0.0  ;;  %v191_v57 = vpack.c.bf16 %v131_v47, %v128_v46 }
  0xba   :  { %v589_v2 = vpop.f32.mrf.mxu2  ;;  %v414_v6 = vpop.f32.mrf.mxu0 }
  0xbb   :  { %v590_v5 = vadd.f32 %v589_v2, %v501_v1  ;;  %v503_v7 = vpop.f32.mrf.mxu1  ;;  %v415_v12 = vadd.f32 %v1470_v51, %v414_v6  ;;  %v136_v6 = vld [vmem:[#allocation3 + $0x260] sm:$0xff] }
  0xbd   :  { %v668_v10 = vmax.f32 %v590_v5, 0.0  ;;  %453 = vmatmul.bf16.gmra.mxu0 %v183_v3  ;;  %v504_v16 = vadd.f32 %v503_v7, %v415_v12  ;;  %v132_v3 = vld [vmem:[#allocation3 + $0x240] sm:$0xff]  ;;  %v133_v5 = vld [vmem:[#allocation3 + $0x248] sm:$0xff]  ;;  %v134_v7 = vld [vmem:[#allocation3 + $0x250] sm:$0xff] }
  0xbe   :  { %542 = vmatmul.bf16.gmra.mxu1 %v184_v4  ;;  %v135_v4 = vld [vmem:[#allocation3 + $0x258] sm:$0xff] }
  0xbf   :  { %631 = vmatmul.bf16.gmra.mxu2 %v185_v8  ;;  %v699_v11 = vpack.c.bf16 %v668_v10, %v667_v9  ;;  %v137_v8 = vld [vmem:[#allocation3 + $0x268] sm:$0xff]  ;;  %v192_v12 = vpack.c.bf16 %v135_v4, %v132_v3 }
  0xc1   :  { %791 = vmatmul.bf16.vlgmr.msra.gmra.mxu3 %v699_v11 }
  0xc2   :  { %v592_v13 = vpop.f32.mrf.mxu2  ;;  %v416_v14 = vpop.f32.mrf.mxu0 }
  0xc3   :  { %v505_v15 = vpop.f32.mrf.mxu1  ;;  %v417_v17 = vadd.f32 %v1470_v51, %v416_v14  ;;  %v593_v24 = vadd.f32 %v592_v13, %v504_v16  ;;  %v193_v13 = vpack.c.bf16 %v136_v6, %v133_v5 }
  0xc5   :  { %v506_v25 = vadd.f32 %v505_v15, %v417_v17  ;;  %v669_v33 = vmax.f32 %v593_v24, 0.0  ;;  %v194_v17 = vpack.c.bf16 %v137_v8, %v134_v7 }
  0xca   :  { %v594_v26 = vpop.f32.mrf.mxu2  ;;  %v419_v30 = vpop.f32.mrf.mxu0 }
  0xcb   :  { %v595_v29 = vadd.f32 %v594_v26, %v506_v25  ;;  %v508_v31 = vpop.f32.mrf.mxu1  ;;  %v420_v36 = vadd.f32 %v1470_v51, %v419_v30  ;;  %v142_v30 = vld [vmem:[#allocation3 + $0x290] sm:$0xff] }
  0xcd   :  { %v670_v34 = vmax.f32 %v595_v29, 0.0  ;;  %458 = vmatmul.bf16.gmra.mxu0 %v186_v27  ;;  %v509_v40 = vadd.f32 %v508_v31, %v420_v36  ;;  %v138_v27 = vld [vmem:[#allocation3 + $0x270] sm:$0xff]  ;;  %v139_v29 = vld [vmem:[#allocation3 + $0x278] sm:$0xff]  ;;  %v140_v31 = vld [vmem:[#allocation3 + $0x280] sm:$0xff] }
  0xce   :  { %547 = vmatmul.bf16.gmra.mxu1 %v187_v28  ;;  %v141_v28 = vld [vmem:[#allocation3 + $0x288] sm:$0xff] }
  0xcf   :  { %636 = vmatmul.bf16.gmra.mxu2 %v188_v32  ;;  %v700_v35 = vpack.c.bf16 %v670_v34, %v669_v33  ;;  %v143_v32 = vld [vmem:[#allocation3 + $0x298] sm:$0xff]  ;;  %v195_v36 = vpack.c.bf16 %v141_v28, %v138_v27 }
  0xd1   :  { %796 = vmatmul.bf16.gmra.mxu3 %v700_v35 }
  0xd2   :  { %v597_v37 = vpop.f32.mrf.mxu2  ;;  %v421_v38 = vpop.f32.mrf.mxu0 }
  0xd3   :  { %v510_v39 = vpop.f32.mrf.mxu1  ;;  %v422_v41 = vadd.f32 %v1470_v51, %v421_v38  ;;  %v598_v48 = vadd.f32 %v597_v37, %v509_v40  ;;  %v196_v37 = vpack.c.bf16 %v142_v30, %v139_v29 }
  0xd5   :  { %v511_v49 = vadd.f32 %v510_v39, %v422_v41  ;;  %v671_v58 = vmax.f32 %v598_v48, 0.0  ;;  %v197_v41 = vpack.c.bf16 %v143_v32, %v140_v31 }
  0xda   :  { %v599_v50 = vpop.f32.mrf.mxu2  ;;  %v424_v55 = vpop.f32.mrf.mxu0 }
  0xdb   :  { %v600_v54 = vadd.f32 %v599_v50, %v511_v49  ;;  %v513_v56 = vpop.f32.mrf.mxu1  ;;  %v425_v61 = vadd.f32 %v1470_v51, %v424_v55  ;;  %v148_v55 = vld [vmem:[#allocation3 + $0x2c0] sm:$0xff] }
  0xdd   :  { %v672_v59 = vmax.f32 %v600_v54, 0.0  ;;  %463 = vmatmul.bf16.gmra.mxu0 %v189_v52  ;;  %v514_v1 = vadd.f32 %v513_v56, %v425_v61  ;;  %v144_v52 = vld [vmem:[#allocation3 + $0x2a0] sm:$0xff]  ;;  %v145_v54 = vld [vmem:[#allocation3 + $0x2a8] sm:$0xff]  ;;  %v146_v56 = vld [vmem:[#allocation3 + $0x2b0] sm:$0xff] }
  0xde   :  { %552 = vmatmul.bf16.gmra.mxu1 %v190_v53  ;;  %v147_v53 = vld [vmem:[#allocation3 + $0x2b8] sm:$0xff] }
  0xdf   :  { %641 = vmatmul.bf16.gmra.mxu2 %v191_v57  ;;  %v701_v60 = vpack.c.bf16 %v672_v59, %v671_v58  ;;  %v149_v57 = vld [vmem:[#allocation3 + $0x2c8] sm:$0xff]  ;;  %v198_v61 = vpack.c.bf16 %v147_v53, %v144_v52 }
  0xe1   :  { %801 = vmatmul.bf16.gmra.mxu3 %v701_v60 }
  0xe2   :  { %v602_v62 = vpop.f32.mrf.mxu2  ;;  %v426_v63 = vpop.f32.mrf.mxu0 }
  0xe3   :  { %v515_v0 = vpop.f32.mrf.mxu1  ;;  %v427_v2 = vadd.f32 %v1470_v51, %v426_v63  ;;  %v603_v9 = vadd.f32 %v602_v62, %v514_v1  ;;  %v199_v62 = vpack.c.bf16 %v148_v55, %v145_v54 }
  0xe5   :  { %v516_v10 = vadd.f32 %v515_v0, %v427_v2  ;;  %v673_v18 = vmax.f32 %v603_v9, 0.0  ;;  %v200_v2 = vpack.c.bf16 %v149_v57, %v146_v56 }
  0xea   :  { %v604_v11 = vpop.f32.mrf.mxu2  ;;  %v429_v15 = vpop.f32.mrf.mxu0 }
  0xeb   :  { %v605_v14 = vadd.f32 %v604_v11, %v516_v10  ;;  %v518_v16 = vpop.f32.mrf.mxu1  ;;  %v430_v21 = vadd.f32 %v1470_v51, %v429_v15  ;;  %v154_v15 = vld [vmem:[#allocation3 + $0x2f0] sm:$0xff] }
  0xed   :  { %v674_v19 = vmax.f32 %v605_v14, 0.0  ;;  %468 = vmatmul.bf16.gmra.mxu0 %v192_v12  ;;  %v519_v25 = vadd.f32 %v518_v16, %v430_v21  ;;  %v150_v12 = vld [vmem:[#allocation3 + $0x2d0] sm:$0xff]  ;;  %v151_v14 = vld [vmem:[#allocation3 + $0x2d8] sm:$0xff]  ;;  %v152_v16 = vld [vmem:[#allocation3 + $0x2e0] sm:$0xff] }
  0xee   :  { %557 = vmatmul.bf16.gmra.mxu1 %v193_v13  ;;  %v153_v13 = vld [vmem:[#allocation3 + $0x2e8] sm:$0xff] }
  0xef   :  { %646 = vmatmul.bf16.gmra.mxu2 %v194_v17  ;;  %v702_v20 = vpack.c.bf16 %v674_v19, %v673_v18  ;;  %v155_v17 = vld [vmem:[#allocation3 + $0x2f8] sm:$0xff]  ;;  %v201_v21 = vpack.c.bf16 %v153_v13, %v150_v12 }
  0xf1   :  { %806 = vmatmul.bf16.gmra.mxu3 %v702_v20 }
  0xf2   :  { %v607_v22 = vpop.f32.mrf.mxu2  ;;  %v431_v23 = vpop.f32.mrf.mxu0 }
  0xf3   :  { %v520_v24 = vpop.f32.mrf.mxu1  ;;  %v432_v26 = vadd.f32 %v1470_v51, %v431_v23  ;;  %v608_v33 = vadd.f32 %v607_v22, %v519_v25  ;;  %v202_v22 = vpack.c.bf16 %v154_v15, %v151_v14 }
  0xf5   :  { %v521_v34 = vadd.f32 %v520_v24, %v432_v26  ;;  %v675_v42 = vmax.f32 %v608_v33, 0.0  ;;  %v203_v26 = vpack.c.bf16 %v155_v17, %v152_v16 }
  0xfa   :  { %v609_v35 = vpop.f32.mrf.mxu2  ;;  %v434_v39 = vpop.f32.mrf.mxu0 }
  0xfb   :  { %v610_v38 = vadd.f32 %v609_v35, %v521_v34  ;;  %v523_v40 = vpop.f32.mrf.mxu1  ;;  %v435_v45 = vadd.f32 %v1470_v51, %v434_v39 }
  0xfd   :  { %v676_v43 = vmax.f32 %v610_v38, 0.0  ;;  %473 = vmatmul.bf16.gmra.mxu0 %v195_v36  ;;  %v524_v49 = vadd.f32 %v523_v40, %v435_v45 }
  0xfe   :  { %562 = vmatmul.bf16.gmra.mxu1 %v196_v37 }
  0xff   :  { %651 = vmatmul.bf16.gmra.mxu2 %v197_v41  ;;  %v703_v44 = vpack.c.bf16 %v676_v43, %v675_v42 }
 0x101   :  { %811 = vmatmul.bf16.gmra.mxu3 %v703_v44 }
 0x102   :  { %v612_v46 = vpop.f32.mrf.mxu2  ;;  %v436_v47 = vpop.f32.mrf.mxu0 }
 0x103   :  { %v525_v48 = vpop.f32.mrf.mxu1  ;;  %v437_v50 = vadd.f32 %v1470_v51, %v436_v47  ;;  %v613_v58 = vadd.f32 %v612_v46, %v524_v49 }
 0x105   :  { %v526_v59 = vadd.f32 %v525_v48, %v437_v50  ;;  %v677_v3 = vmax.f32 %v613_v58, 0.0 }
 0x10a   :  { %v614_v60 = vpop.f32.mrf.mxu2  ;;  %v439_v0 = vpop.f32.mrf.mxu0 }
 0x10b   :  { %v615_v63 = vadd.f32 %v614_v60, %v526_v59  ;;  %v528_v1 = vpop.f32.mrf.mxu1  ;;  %v440_v6 = vadd.f32 %v1470_v51, %v439_v0 }
 0x10d   :  { %v678_v4 = vmax.f32 %v615_v63, 0.0  ;;  %478 = vmatmul.bf16.gmra.mxu0 %v198_v61  ;;  %v529_v10 = vadd.f32 %v528_v1, %v440_v6 }
 0x10e   :  { %567 = vmatmul.bf16.gmra.mxu1 %v199_v62  ;;  %v1494_v62 = vld [vmem:[%s1583_s4] ss:$0 sm:$0xff] }
 0x10f   :  { %656 = vmatmul.bf16.gmra.mxu2 %v200_v2  ;;  %v704_v5 = vpack.c.bf16 %v678_v4, %v677_v3 }
 0x111   :  { %816 = vmatmul.bf16.gmra.mxu3 %v704_v5 }
 0x112   :  { %v617_v7 = vpop.f32.mrf.mxu2  ;;  %v441_v8 = vpop.f32.mrf.mxu0 }
 0x113   :  { %v530_v9 = vpop.f32.mrf.mxu1  ;;  %v442_v11 = vadd.f32 %v1470_v51, %v441_v8  ;;  %v618_v18 = vadd.f32 %v617_v7, %v529_v10 }
 0x115   :  { %v531_v19 = vadd.f32 %v530_v9, %v442_v11  ;;  %v679_v27 = vmax.f32 %v618_v18, 0.0 }
 0x11a   :  { %v619_v20 = vpop.f32.mrf.mxu2  ;;  %v444_v24 = vpop.f32.mrf.mxu0 }
 0x11b   :  { %v620_v23 = vadd.f32 %v619_v20, %v531_v19  ;;  %v533_v25 = vpop.f32.mrf.mxu1  ;;  %v445_v30 = vadd.f32 %v1470_v51, %v444_v24 }
 0x11d   :  { %v680_v28 = vmax.f32 %v620_v23, 0.0  ;;  %483 = vmatmul.bf16.gmra.mxu0 %v201_v21  ;;  %v534_v34 = vadd.f32 %v533_v25, %v445_v30 }
 0x11e   :  { %572 = vmatmul.bf16.gmra.mxu1 %v202_v22 }
 0x11f   :  { %661 = vmatmul.bf16.gmra.mxu2 %v203_v26  ;;  %v705_v29 = vpack.c.bf16 %v680_v28, %v679_v27 }
 0x121   :  { %821 = vmatmul.bf16.gmra.mxu3 %v705_v29 }
 0x122   :  { %v622_v31 = vpop.f32.mrf.mxu2  ;;  %v446_v32 = vpop.f32.mrf.mxu0 }
 0x123   :  { %v535_v33 = vpop.f32.mrf.mxu1  ;;  %v447_v35 = vadd.f32 %v1470_v51, %v446_v32  ;;  %v623_v36 = vadd.f32 %v622_v31, %v534_v34 }
 0x125   :  { %v536_v37 = vadd.f32 %v535_v33, %v447_v35  ;;  %v681_v42 = vmax.f32 %v623_v36, 0.0 }
 0x12a   :  { %v624_v38 = vpop.f32.mrf.mxu2  ;;  %v449_v40 = vpop.f32.mrf.mxu0 }
 0x12b   :  { %v625_v39 = vadd.f32 %v624_v38, %v536_v37  ;;  %v538_v41 = vpop.f32.mrf.mxu1  ;;  %v450_v45 = vadd.f32 %v1470_v51, %v449_v40 }
 0x12d   :  { %v682_v43 = vmax.f32 %v625_v39, 0.0  ;;  %v539_v49 = vadd.f32 %v538_v41, %v450_v45 }
 0x12f   :  { %v706_v44 = vpack.c.bf16 %v682_v43, %v681_v42 }
 0x131   :  { %826 = vmatmul.bf16.gmra.mxu3 %v706_v44 }
 0x132   :  { %v627_v46 = vpop.f32.mrf.mxu2  ;;  %v451_v47 = vpop.f32.mrf.mxu0 }
 0x133   :  { %v540_v48 = vpop.f32.mrf.mxu1  ;;  %v452_v50 = vadd.f32 %v1470_v51, %v451_v47  ;;  %v628_v52 = vadd.f32 %v627_v46, %v539_v49 }
 0x135   :  { %v541_v53 = vadd.f32 %v540_v48, %v452_v50  ;;  %v683_v58 = vmax.f32 %v628_v52, 0.0 }
 0x13a   :  { %v629_v54 = vpop.f32.mrf.mxu2  ;;  %v454_v56 = vpop.f32.mrf.mxu0 }
 0x13b   :  { %v630_v55 = vadd.f32 %v629_v54, %v541_v53  ;;  %v543_v57 = vpop.f32.mrf.mxu1  ;;  %v455_v61 = vadd.f32 %v1470_v51, %v454_v56 }
 0x13d   :  { %v684_v59 = vmax.f32 %v630_v55, 0.0  ;;  %v544_v3 = vadd.f32 %v543_v57, %v455_v61 }
 0x13f   :  { %v707_v60 = vpack.c.bf16 %v684_v59, %v683_v58 }
 0x141   :  { %831 = vmatmul.bf16.gmra.mxu3 %v707_v60 }
 0x142   :  { %v632_v63 = vpop.f32.mrf.mxu2  ;;  %v456_v0 = vpop.f32.mrf.mxu0 }
 0x143   :  { %v545_v1 = vpop.f32.mrf.mxu1  ;;  %v457_v4 = vadd.f32 %v1470_v51, %v456_v0  ;;  %v633_v7 = vadd.f32 %v632_v63, %v544_v3 }
 0x144   :  { %v792_v2 = vpop.f32.mrf.mxu3 }
 0x145   :  { %v793_v5 = vadd.f32 %v1494_v62, %v792_v2  ;;  %v546_v8 = vadd.f32 %v545_v1, %v457_v4  ;;  %v685_v14 = vmax.f32 %v633_v7, 0.0 }
 0x147   :  { %v872_v6 = vmax.f32 %v793_v5, 0.0 }
 0x149   :  { %904 = vxpose.xlu0.b32.start [1/16] (narrow) %v872_v6, 64 }
 0x14a   :  { %v634_v9 = vpop.f32.mrf.mxu2  ;;  %v459_v11 = vpop.f32.mrf.mxu0 }
 0x14b   :  { %v635_v10 = vadd.f32 %v634_v9, %v546_v8  ;;  %v548_v12 = vpop.f32.mrf.mxu1  ;;  %v460_v19 = vadd.f32 %v1470_v51, %v459_v11 }
 0x14c   :  { %v794_v13 = vpop.f32.mrf.mxu3 }
 0x14d   :  { %v686_v15 = vmax.f32 %v635_v10, 0.0  ;;  %v795_v16 = vadd.f32 %v1494_v62, %v794_v13  ;;  %v549_v24 = vadd.f32 %v548_v12, %v460_v19 }
 0x14f   :  { %v708_v17 = vpack.c.bf16 %v686_v15, %v685_v14  ;;  %v873_v18 = vmax.f32 %v795_v16, 0.0 }
 0x151   :  { %836 = vmatmul.bf16.gmra.mxu3 %v708_v17  ;;  %905 = vxpose.xlu0.b32.cont [2/16] (narrow) %v873_v18, 64 }
 0x152   :  { %v637_v20 = vpop.f32.mrf.mxu2  ;;  %v461_v21 = vpop.f32.mrf.mxu0 }
 0x153   :  { %v550_v22 = vpop.f32.mrf.mxu1  ;;  %v462_v25 = vadd.f32 %v1470_v51, %v461_v21  ;;  %v638_v28 = vadd.f32 %v637_v20, %v549_v24 }
 0x154   :  { %v797_v23 = vpop.f32.mrf.mxu3 }
 0x155   :  { %v798_v26 = vadd.f32 %v1494_v62, %v797_v23  ;;  %v551_v29 = vadd.f32 %v550_v22, %v462_v25  ;;  %v687_v35 = vmax.f32 %v638_v28, 0.0 }
 0x157   :  { %v874_v27 = vmax.f32 %v798_v26, 0.0 }
 0x159   :  { %906 = vxpose.xlu0.b32.cont [3/16] (narrow) %v874_v27, 64 }
 0x15a   :  { %v639_v30 = vpop.f32.mrf.mxu2  ;;  %v464_v32 = vpop.f32.mrf.mxu0 }
 0x15b   :  { %v640_v31 = vadd.f32 %v639_v30, %v551_v29  ;;  %v553_v33 = vpop.f32.mrf.mxu1  ;;  %v465_v40 = vadd.f32 %v1470_v51, %v464_v32 }
 0x15c   :  { %v799_v34 = vpop.f32.mrf.mxu3 }
 0x15d   :  { %v688_v36 = vmax.f32 %v640_v31, 0.0  ;;  %v800_v37 = vadd.f32 %v1494_v62, %v799_v34  ;;  %v554_v45 = vadd.f32 %v553_v33, %v465_v40 }
 0x15f   :  { %v709_v38 = vpack.c.bf16 %v688_v36, %v687_v35  ;;  %v875_v39 = vmax.f32 %v800_v37, 0.0 }
 0x161   :  { %841 = vmatmul.bf16.gmra.mxu3 %v709_v38  ;;  %907 = vxpose.xlu0.b32.cont [4/16] (narrow) %v875_v39, 64 }
 0x162   :  { %v642_v41 = vpop.f32.mrf.mxu2  ;;  %v466_v42 = vpop.f32.mrf.mxu0 }
 0x163   :  { %v555_v43 = vpop.f32.mrf.mxu1  ;;  %v467_v46 = vadd.f32 %v1470_v51, %v466_v42  ;;  %v643_v49 = vadd.f32 %v642_v41, %v554_v45 }
 0x164   :  { %v802_v44 = vpop.f32.mrf.mxu3 }
 0x165   :  { %v803_v47 = vadd.f32 %v1494_v62, %v802_v44  ;;  %v556_v50 = vadd.f32 %v555_v43, %v467_v46  ;;  %v689_v57 = vmax.f32 %v643_v49, 0.0 }
 0x167   :  { %v876_v48 = vmax.f32 %v803_v47, 0.0 }
 0x169   :  { %908 = vxpose.xlu0.b32.cont [5/16] (narrow) %v876_v48, 64 }
 0x16a   :  { %v644_v52 = vpop.f32.mrf.mxu2  ;;  %v469_v54 = vpop.f32.mrf.mxu0 }
 0x16b   :  { %v645_v53 = vadd.f32 %v644_v52, %v556_v50  ;;  %v558_v55 = vpop.f32.mrf.mxu1  ;;  %v470_v63 = vadd.f32 %v1470_v51, %v469_v54 }
 0x16c   :  { %v804_v56 = vpop.f32.mrf.mxu3 }
 0x16d   :  { %v690_v58 = vmax.f32 %v645_v53, 0.0  ;;  %v805_v59 = vadd.f32 %v1494_v62, %v804_v56  ;;  %v559_v4 = vadd.f32 %v558_v55, %v470_v63 }
 0x16f   :  { %v710_v60 = vpack.c.bf16 %v690_v58, %v689_v57  ;;  %v877_v61 = vmax.f32 %v805_v59, 0.0 }
 0x171   :  { %846 = vmatmul.bf16.gmra.mxu3 %v710_v60  ;;  %909 = vxpose.xlu0.b32.cont [6/16] (narrow) %v877_v61, 64 }
 0x172   :  { %v647_v0 = vpop.f32.mrf.mxu2  ;;  %v471_v1 = vpop.f32.mrf.mxu0 }
 0x173   :  { %v560_v2 = vpop.f32.mrf.mxu1  ;;  %v472_v5 = vadd.f32 %v1470_v51, %v471_v1  ;;  %v648_v8 = vadd.f32 %v647_v0, %v559_v4  ;;  %v968_v4 = vld [vmem:[%s1584_s5] sm:$0xff] }
 0x174   :  { %v807_v3 = vpop.f32.mrf.mxu3 }
 0x175   :  { %v808_v6 = vadd.f32 %v1494_v62, %v807_v3  ;;  %v561_v9 = vadd.f32 %v560_v2, %v472_v5  ;;  %v691_v15 = vmax.f32 %v648_v8, 0.0  ;;  %v1395_v8 = vmov 0  }
 0x176   :  { %1299 = vset.pattern.permute.xlu2 %v1395_v8 }
 0x177   :  { %v878_v7 = vmax.f32 %v808_v6, 0.0  ;;  %978 = vperm.xlu2 %1299, %v968_v4  }
 0x179   :  { %910 = vxpose.xlu0.b32.cont [7/16] (narrow) %v878_v7, 64 }
 0x17a   :  { %v649_v10 = vpop.f32.mrf.mxu2  ;;  %v474_v12 = vpop.f32.mrf.mxu0 }
 0x17b   :  { %v650_v11 = vadd.f32 %v649_v10, %v561_v9  ;;  %v563_v13 = vpop.f32.mrf.mxu1  ;;  %v475_v20 = vadd.f32 %v1470_v51, %v474_v12 }
 0x17c   :  { %v809_v14 = vpop.f32.mrf.mxu3 }
 0x17d   :  { %v692_v16 = vmax.f32 %v650_v11, 0.0  ;;  %v810_v17 = vadd.f32 %v1494_v62, %v809_v14  ;;  %v564_v25 = vadd.f32 %v563_v13, %v475_v20  ;;  %v969_v20 = vld [vmem:[%s1584_s5 + $0x8] sm:$0xff] }
 0x17f   :  { %v711_v18 = vpack.c.bf16 %v692_v16, %v691_v15  ;;  %v879_v19 = vmax.f32 %v810_v17, 0.0  ;;  %983 = vperm.xlu2 %1299, %v969_v20  }
 0x181   :  { %851 = vmatmul.bf16.gmra.mxu3 %v711_v18  ;;  %911 = vxpose.xlu0.b32.cont [8/16] (narrow) %v879_v19, 64 }
 0x182   :  { %v652_v21 = vpop.f32.mrf.mxu2  ;;  %v476_v22 = vpop.f32.mrf.mxu0 }
 0x183   :  { %v565_v23 = vpop.f32.mrf.mxu1  ;;  %v477_v26 = vadd.f32 %v1470_v51, %v476_v22  ;;  %v653_v29 = vadd.f32 %v652_v21, %v564_v25 }
 0x184   :  { %v812_v24 = vpop.f32.mrf.mxu3 }
 0x185   :  { %v813_v27 = vadd.f32 %v1494_v62, %v812_v24  ;;  %v566_v30 = vadd.f32 %v565_v23, %v477_v26  ;;  %v693_v36 = vmax.f32 %v653_v29, 0.0  ;;  %v970_v24 = vld [vmem:[%s1584_s5 + $0x10] sm:$0xff] }
 0x187   :  { %v880_v28 = vmax.f32 %v813_v27, 0.0  ;;  %988 = vperm.xlu2 %1299, %v970_v24  }
 0x189   :  { %912 = vxpose.xlu0.b32.cont [9/16] (narrow) %v880_v28, 64  ;;  %v971_v28 = vld [vmem:[%s1584_s5 + $0x18] sm:$0xff] }
 0x18a   :  { %v654_v31 = vpop.f32.mrf.mxu2  ;;  %v479_v33 = vpop.f32.mrf.mxu0 }
 0x18b   :  { %v655_v32 = vadd.f32 %v654_v31, %v566_v30  ;;  %v568_v34 = vpop.f32.mrf.mxu1  ;;  %v480_v41 = vadd.f32 %v1470_v51, %v479_v33 }
 0x18c   :  { %v814_v35 = vpop.f32.mrf.mxu3 }
 0x18d   :  { %v694_v37 = vmax.f32 %v655_v32, 0.0  ;;  %v815_v38 = vadd.f32 %v1494_v62, %v814_v35  ;;  %v569_v46 = vadd.f32 %v568_v34, %v480_v41  ;;  %v972_v32 = vld [vmem:[%s1584_s5 + $0x20] sm:$0xff] }
 0x18f   :  { %v712_v39 = vpack.c.bf16 %v694_v37, %v693_v36  ;;  %v881_v40 = vmax.f32 %v815_v38, 0.0  ;;  %993 = vperm.xlu2 %1299, %v971_v28   ;;  %v973_v36 = vld [vmem:[%s1584_s5 + $0x28] sm:$0xff] }
 0x191   :  { %856 = vmatmul.bf16.gmra.mxu3 %v712_v39  ;;  %913 = vxpose.xlu0.b32.cont [10/16] (narrow) %v881_v40, 64  ;;  %v974_v40 = vld [vmem:[%s1584_s5 + $0x30] sm:$0xff] }
 0x192   :  { %v657_v42 = vpop.f32.mrf.mxu2  ;;  %v481_v43 = vpop.f32.mrf.mxu0 }
 0x193   :  { %v570_v44 = vpop.f32.mrf.mxu1  ;;  %v482_v47 = vadd.f32 %v1470_v51, %v481_v43  ;;  %v658_v50 = vadd.f32 %v657_v42, %v569_v46 }
 0x194   :  { %v817_v45 = vpop.f32.mrf.mxu3 }
 0x195   :  { %v818_v48 = vadd.f32 %v1494_v62, %v817_v45  ;;  %v571_v52 = vadd.f32 %v570_v44, %v482_v47  ;;  %v695_v57 = vmax.f32 %v658_v50, 0.0  ;;  %v975_v44 = vld [vmem:[%s1584_s5 + $0x38] sm:$0xff] }
 0x197   :  { %v882_v49 = vmax.f32 %v818_v48, 0.0  ;;  %998 = vperm.xlu2 %1299, %v972_v32  }
 0x199   :  { %914 = vxpose.xlu0.b32.cont [11/16] (narrow) %v882_v49, 64 }
 0x19a   :  { %v659_v53 = vpop.f32.mrf.mxu2  ;;  %v484_v55 = vpop.f32.mrf.mxu0 }
 0x19b   :  { %v660_v54 = vadd.f32 %v659_v53, %v571_v52  ;;  %v573_v60 = vpop.f32.mrf.mxu1  ;;  %v485_v0 = vadd.f32 %v1470_v51, %v484_v55 }
 0x19c   :  { %v819_v56 = vpop.f32.mrf.mxu3 }
 0x19d   :  { %v696_v58 = vmax.f32 %v660_v54, 0.0  ;;  %v820_v59 = vadd.f32 %v1494_v62, %v819_v56  ;;  %v574_v5 = vadd.f32 %v573_v60, %v485_v0 }
 0x19f   :  { %v713_v61 = vpack.c.bf16 %v696_v58, %v695_v57  ;;  %v883_v63 = vmax.f32 %v820_v59, 0.0  ;;  %1003 = vperm.xlu2 %1299, %v973_v36  }
 0x1a1   :  { %861 = vmatmul.bf16.gmra.mxu3 %v713_v61  ;;  %915 = vxpose.xlu0.b32.cont [12/16] (narrow) %v883_v63, 64 }
 0x1a2   :  { %v662_v1 = vpop.f32.mrf.mxu2  ;;  %v486_v2 = vpop.f32.mrf.mxu0 }
 0x1a3   :  { %v487_v6 = vadd.f32 %v1470_v51, %v486_v2  ;;  %v575_v10 = vpop.f32.mrf.mxu1  ;;  %v663_v11 = vadd.f32 %v662_v1, %v574_v5 }
 0x1a4   :  { %v822_v3 = vpop.f32.mrf.mxu3 }
 0x1a5   :  { %v823_v7 = vadd.f32 %v1494_v62, %v822_v3  ;;  %v576_v12 = vadd.f32 %v575_v10, %v487_v6  ;;  %v697_v16 = vmax.f32 %v663_v11, 0.0 }
 0x1a7   :  { %v884_v9 = vmax.f32 %v823_v7, 0.0  ;;  %1008 = vperm.xlu2 %1299, %v974_v40  }
 0x1a9   :  { %916 = vxpose.xlu0.b32.cont [13/16] (narrow) %v884_v9, 64 }
 0x1aa   :  { %v664_v13 = vpop.f32.mrf.mxu2 }
 0x1ab   :  { %v665_v14 = vadd.f32 %v664_v13, %v576_v12 }
 0x1ac   :  { %v824_v15 = vpop.f32.mrf.mxu3 }
 0x1ad   :  { %v698_v17 = vmax.f32 %v665_v14, 0.0  ;;  %v825_v18 = vadd.f32 %v1494_v62, %v824_v15 }
 0x1af   :  { %v714_v19 = vpack.c.bf16 %v698_v17, %v697_v16  ;;  %v885_v51 = vmax.f32 %v825_v18, 0.0  ;;  %1013 = vperm.xlu2 %1299, %v975_v44  }
 0x1b1   :  { %866 = vmatmul.bf16.gmra.mxu3 %v714_v19  ;;  %917 = vxpose.xlu0.b32.cont [14/16] (narrow) %v885_v51, 64 }
 0x1b4   :  { %v827_v21 = vpop.f32.mrf.mxu3 }
 0x1b5   :  { %v828_v22 = vadd.f32 %v1494_v62, %v827_v21 }
 0x1b7   :  { %v886_v23 = vmax.f32 %v828_v22, 0.0 }
 0x1b9   :  { %918 = vxpose.xlu0.b32.cont [15/16] (narrow) %v886_v23, 64 }
 0x1bc   :  { %v829_v25 = vpop.f32.mrf.mxu3 }
 0x1bd   :  { %v830_v26 = vadd.f32 %v1494_v62, %v829_v25 }
 0x1bf   :  { %v887_v27 = vmax.f32 %v830_v26, 0.0 }
 0x1c1   :  { %919 = vxpose.xlu0.b32.end [16/16] (narrow) %v887_v27, 64 }
 0x1c4   :  { %v832_v29 = vpop.f32.mrf.mxu3 }
 0x1c5   :  { %v833_v30 = vadd.f32 %v1494_v62, %v832_v29 }
 0x1c7   :  { %v888_v31 = vmax.f32 %v833_v30, 0.0 }
 0x1c9   :  { %936 = vxpose.xlu1.b32.start [1/16] (narrow) %v888_v31, 64 }
 0x1cc   :  { %v834_v33 = vpop.f32.mrf.mxu3 }
 0x1cd   :  { %v835_v34 = vadd.f32 %v1494_v62, %v834_v33 }
 0x1cf   :  { %v889_v35 = vmax.f32 %v835_v34, 0.0 }
 0x1d1   :  { %937 = vxpose.xlu1.b32.cont [2/16] (narrow) %v889_v35, 64  ;;  %v979_v17 = vpop.permute.xlu2 %978 }
 0x1d4   :  { %v837_v37 = vpop.f32.mrf.mxu3 }
 0x1d5   :  { %v838_v38 = vadd.f32 %v1494_v62, %v837_v37 }
 0x1d7   :  { %v890_v39 = vmax.f32 %v838_v38, 0.0 }
 0x1d9   :  { %938 = vxpose.xlu1.b32.cont [3/16] (narrow) %v890_v39, 64  ;;  %v984_v21 = vpop.permute.xlu2 %983 }
 0x1dc   :  { %v839_v41 = vpop.f32.mrf.mxu3 }
 0x1dd   :  { %v840_v42 = vadd.f32 %v1494_v62, %v839_v41 }
 0x1df   :  { %v891_v43 = vmax.f32 %v840_v42, 0.0 }
 0x1e1   :  { %939 = vxpose.xlu1.b32.cont [4/16] (narrow) %v891_v43, 64  ;;  %v989_v22 = vpop.permute.xlu2 %988 }
 0x1e4   :  { %v842_v45 = vpop.f32.mrf.mxu3 }
 0x1e5   :  { %v843_v46 = vadd.f32 %v1494_v62, %v842_v45 }
 0x1e7   :  { %v892_v47 = vmax.f32 %v843_v46, 0.0 }
 0x1e9   :  { %940 = vxpose.xlu1.b32.cont [5/16] (narrow) %v892_v47, 64  ;;  %v994_v24 = vpop.permute.xlu2 %993 }
 0x1ec   :  { %v844_v48 = vpop.f32.mrf.mxu3 }
 0x1ed   :  { %v845_v49 = vadd.f32 %v1494_v62, %v844_v48  ;;  %v920_v18 = vpop.trf.xlu0 }
 0x1ee   :  { %v1016_v28 = vmul.f32 %v979_v17, %v920_v18 }
 0x1ef   :  { %v893_v50 = vmax.f32 %v845_v49, 0.0 }
 0x1f1   :  { %941 = vxpose.xlu1.b32.cont [6/16] (narrow) %v893_v50, 64  ;;  %v999_v26 = vpop.permute.xlu2 %998 }
 0x1f4   :  { %v847_v52 = vpop.f32.mrf.mxu3 }
 0x1f5   :  { %v848_v53 = vadd.f32 %v1494_v62, %v847_v52 }
 0x1f7   :  { %v894_v54 = vmax.f32 %v848_v53, 0.0 }
 0x1f9   :  { %942 = vxpose.xlu1.b32.cont [7/16] (narrow) %v894_v54, 64  ;;  %v1004_v30 = vpop.permute.xlu2 %1003 }
 0x1fc   :  { %v849_v55 = vpop.f32.mrf.mxu3 }
 0x1fd   :  { %v850_v56 = vadd.f32 %v1494_v62, %v849_v55 }
 0x1ff   :  { %v895_v57 = vmax.f32 %v850_v56, 0.0 }
 0x201   :  { %943 = vxpose.xlu1.b32.cont [8/16] (narrow) %v895_v57, 64  ;;  %v1009_v37 = vpop.permute.xlu2 %1008 }
 0x204   :  { %v852_v58 = vpop.f32.mrf.mxu3 }
 0x205   :  { %v853_v59 = vadd.f32 %v1494_v62, %v852_v58 }
 0x207   :  { %v896_v60 = vmax.f32 %v853_v59, 0.0 }
 0x209   :  { %944 = vxpose.xlu1.b32.cont [9/16] (narrow) %v896_v60, 64  ;;  %v1014_v46 = vpop.permute.xlu2 %1013 }
 0x20c   :  { %v854_v61 = vpop.f32.mrf.mxu3 }
 0x20d   :  { %v855_v63 = vadd.f32 %v1494_v62, %v854_v61 }
 0x20f   :  { %v897_v0 = vmax.f32 %v855_v63, 0.0 }
 0x211   :  { %945 = vxpose.xlu1.b32.cont [10/16] (narrow) %v897_v0, 64 }
 0x214   :  { %v857_v1 = vpop.f32.mrf.mxu3 }
 0x215   :  { %v858_v2 = vadd.f32 %v1494_v62, %v857_v1 }
 0x217   :  { %v898_v3 = vmax.f32 %v858_v2, 0.0 }
 0x219   :  { %946 = vxpose.xlu1.b32.cont [11/16] (narrow) %v898_v3, 64 }
 0x21c   :  { %v859_v4 = vpop.f32.mrf.mxu3 }
 0x21d   :  { %v860_v5 = vadd.f32 %v1494_v62, %v859_v4 }
 0x21f   :  { %v899_v6 = vmax.f32 %v860_v5, 0.0 }
 0x221   :  { %947 = vxpose.xlu1.b32.cont [12/16] (narrow) %v899_v6, 64  ;;  %v1059_v6 = vstv %s1585_s6  ;;  %s1396_s6 = smov [#allocation8]  }
 0x222   :  { %s1116_s22 = sshll.u32 %s1396_s6, 4  ;;  %s1117_s22 = int_to_ptr.vmem [resolvable:$true] %s1116_s22 }
 0x224   :  { %v862_v7 = vpop.f32.mrf.mxu3 }
 0x225   :  { %v863_v9 = vadd.f32 %v1494_v62, %v862_v7 }
 0x227   :  { %v900_v10 = vmax.f32 %v863_v9, 0.0 }
 0x228   :  { %1300 = vset.pattern.permute.xlu0 %v1395_v8  ;;  %v921_v8 = vpop.trf.xlu0 }
 0x229   :  { %948 = vxpose.xlu1.b32.cont [13/16] (narrow) %v900_v10, 64  ;;  %v1018_v29 = vmul.f32 %v984_v21, %v921_v8 }
 0x22b   :  { %v1032_v33 = vadd.f32 %v1018_v29, %v1016_v28 }
 0x22c   :  { %v864_v11 = vpop.f32.mrf.mxu3 }
 0x22d   :  { %v865_v12 = vadd.f32 %v1494_v62, %v864_v11 }
 0x22f   :  { %v901_v13 = vmax.f32 %v865_v12, 0.0 }
 0x230   :  { %v922_v23 = vpop.trf.xlu0 }
 0x231   :  { %949 = vxpose.xlu1.b32.cont [14/16] (narrow) %v901_v13, 64  ;;  %v1020_v34 = vmul.f32 %v989_v22, %v922_v23 }
 0x233   :  { %v1033_v35 = vadd.f32 %v1032_v33, %v1020_v34 }
 0x234   :  { %v867_v14 = vpop.f32.mrf.mxu3 }
 0x235   :  { %v868_v15 = vadd.f32 %v1494_v62, %v867_v14 }
 0x237   :  { %v902_v16 = vmax.f32 %v868_v15, 0.0 }
 0x238   :  { %v923_v25 = vpop.trf.xlu0 }
 0x239   :  { %950 = vxpose.xlu1.b32.cont [15/16] (narrow) %v902_v16, 64  ;;  %v1022_v36 = vmul.f32 %v994_v24, %v923_v25 }
 0x23b   :  { %v1034_v39 = vadd.f32 %v1033_v35, %v1022_v36 }
 0x23c   :  { %v869_v19 = vpop.f32.mrf.mxu3 }
 0x23d   :  { %v870_v51 = vadd.f32 %v1494_v62, %v869_v19 }
 0x23f   :  { %v903_v20 = vmax.f32 %v870_v51, 0.0 }
 0x240   :  { %v924_v27 = vpop.trf.xlu0 }
 0x241   :  { %951 = vxpose.xlu1.b32.end [16/16] (narrow) %v903_v20, 64  ;;  %v1024_v40 = vmul.f32 %v999_v26, %v924_v27 }
 0x243   :  { %v1035_v41 = vadd.f32 %v1034_v39, %v1024_v40 }
 0x248   :  { %v925_v31 = vpop.trf.xlu0 }
 0x249   :  { %v1026_v42 = vmul.f32 %v1004_v30, %v925_v31 }
 0x24b   :  { %v1036_v44 = vadd.f32 %v1035_v41, %v1026_v42 }
 0x250   :  { %v926_v38 = vpop.trf.xlu0 }
 0x251   :  { %v1028_v45 = vmul.f32 %v1009_v37, %v926_v38 }
 0x253   :  { %v1037_v48 = vadd.f32 %v1036_v44, %v1028_v45 }
 0x258   :  { %v927_v47 = vpop.trf.xlu0 }
 0x259   :  { %v1030_v49 = vmul.f32 %v1014_v46, %v927_v47 }
 0x25b   :  { %v1038_v52 = vadd.f32 %v1037_v48, %v1030_v49 }
 0x25d   :  { %v1039_v53 = vrot.slane %v1038_v52, 4 }
 0x25f   :  { %v1040_v55 = vadd.f32 %v1039_v53, %v1038_v52 }
 0x261   :  { %v1041_v56 = vrot.slane %v1040_v55, 2 }
 0x263   :  { %v1042_v58 = vadd.f32 %v1041_v56, %v1040_v55 }
 0x265   :  { %v1043_v63 = vrot.slane %v1042_v58, 1 }
 0x267   :  { %v1044_v5 = vadd.f32 %v1043_v63, %v1042_v58 }
 0x269   :  { %v1060_v12 = vadd.f32 %v1059_v6, %v1044_v5 }
 0x26d   :  { %v952_v32 = vpop.trf.xlu1 }
 0x26e   :  { %v1017_v60 = vmul.f32 %v979_v17, %v952_v32  ;;  %v1257_v17 = vmul.f32 -1.442695, %v1060_v12 }
 0x270   :  { %1303 = vpow2.f32 %v1257_v17 }
 0x275   :  { %v953_v62 = vpop.trf.xlu1 }
 0x276   :  { %v1019_v59 = vmul.f32 %v984_v21, %v953_v62  ;;  %v1304_v8 = vpop.eup %1303 }
 0x277   :  { %v1068_v23 = vadd.f32 1.0, %v1304_v8 }
 0x278   :  { %v1045_v0 = vadd.f32 %v1019_v59, %v1017_v60 }
 0x279   :  { %1305 = vrcp.f32 %v1068_v23  ;;  %vm1075_vm0 = vweird.f32 %v1068_v23  ;;  %v1081_v62 = vand.u32 2147483648, %v1068_v23  ;;  %v1079_v38 = vand.u32 2147483647, %v1068_v23 }
 0x27b   :  { %v1082_v44 = vor.u32 1.1754944e-38, %v1081_v62  ;;  %vm1080_vm6 = vcmp.eq.f32.partialorder %v1079_v38, 8.507059e+37 }
 0x27d   :  { %v954_v43 = vpop.trf.xlu1 }
 0x27e   :  { %v1021_v61 = vmul.f32 %v989_v22, %v954_v43  ;;  %v1106_v43 = vlaneseq }
 0x27f   :  { %v1306_v27 = vpop.eup %1305 }
 0x280   :  { %v1046_v3 = vadd.f32 %v1045_v0, %v1021_v61  ;;  %vm1076_vm1 = vweird.f32 %v1306_v27  ;;  %vm1108_vm9 = vcmp.lt.s32.totalorder %v1106_v43, 256 }
 0x281   :  { %vm1570_vm3 = vmor %vm1075_vm0, %vm1076_vm1 }
 0x285   :  { %v955_v50 = vpop.trf.xlu1 }
 0x286   :  { %v1023_v1 = vmul.f32 %v994_v24, %v955_v50 }
 0x288   :  { %v1047_v7 = vadd.f32 %v1046_v3, %v1023_v1 }
 0x28d   :  { %v956_v54 = vpop.trf.xlu1 }
 0x28e   :  { %v1025_v4 = vmul.f32 %v999_v26, %v956_v54 }
 0x290   :  { %v1048_v10 = vadd.f32 %v1047_v7, %v1025_v4 }
 0x295   :  { %v957_v57 = vpop.trf.xlu1 }
 0x296   :  { %v1027_v9 = vmul.f32 %v1004_v30, %v957_v57  ;;  %v1071_v30 = vmul.f32 %v1306_v27, %v1068_v23 }
 0x298   :  { %v1049_v13 = vadd.f32 %v1048_v10, %v1027_v9  ;;  %v1072_v31 = vsub.f32 1.0, %v1071_v30 }
 0x29a   :  { %v1073_v33 = vmul.f32 %v1306_v27, %v1072_v31 }
 0x29c   :  { %v1074_v36 = vadd.f32 %v1306_v27, %v1073_v33 }
 0x29d   :  { %v958_v2 = vpop.trf.xlu1 }
 0x29e   :  { %v1029_v11 = vmul.f32 %v1009_v37, %v958_v2 }
 0x2a0   :  { %v1050_v15 = vadd.f32 %v1049_v13, %v1029_v11 }
 0x2a5   :  { %v959_v14 = vpop.trf.xlu1 }
 0x2a6   :  { %v1031_v16 = vmul.f32 %v1014_v46, %v959_v14  ;;  %v1078_v46 = vsel %vm1570_vm3, %v1306_v27, %v1074_v36 }
 0x2a7   :  { %v1083_v50 = vsel %vm1080_vm6, %v1082_v44, %v1078_v46 }
 0x2a8   :  { %v1051_v18 = vadd.f32 %v1050_v15, %v1031_v16 }
 0x2aa   :  { %v1052_v19 = vrot.slane %v1051_v18, 4 }
 0x2ac   :  { %v1053_v51 = vadd.f32 %v1052_v19, %v1051_v18 }
 0x2ae   :  { %v1054_v20 = vrot.slane %v1053_v51, 2 }
 0x2b0   :  { %v1055_v21 = vadd.f32 %v1054_v20, %v1053_v51 }
 0x2b2   :  { %v1056_v22 = vrot.slane %v1055_v21, 1 }
 0x2b4   :  { %v1057_v24 = vadd.f32 %v1056_v22, %v1055_v21 }
 0x2b6   :  { %v1061_v25 = vadd.f32 %v1059_v6, %v1057_v24 }
 0x2b8   :  { %v1258_v26 = vmul.f32 -1.442695, %v1061_v25 }
 0x2ba   :  { %1307 = vpow2.f32 %v1258_v26 }
 0x2c0   :  { %v1308_v28 = vpop.eup %1307 }
 0x2c1   :  { %v1069_v29 = vadd.f32 1.0, %v1308_v28 }
 0x2c3   :  { %1309 = vrcp.f32 %v1069_v29  ;;  %v1096_v37 = vand.u32 2147483648, %v1069_v29  ;;  %v1094_v40 = vand.u32 2147483647, %v1069_v29  ;;  %vm1090_vm4 = vweird.f32 %v1069_v29 }
 0x2c5   :  { %v1097_v45 = vor.u32 1.1754944e-38, %v1096_v37  ;;  %vm1095_vm7 = vcmp.eq.f32.partialorder %v1094_v40, 8.507059e+37 }
 0x2c9   :  { %v1310_v32 = vpop.eup %1309 }
 0x2ca   :  { %v1086_v34 = vmul.f32 %v1310_v32, %v1069_v29  ;;  %vm1091_vm2 = vweird.f32 %v1310_v32 }
 0x2cb   :  { %vm1092_vm5 = vmor %vm1090_vm4, %vm1091_vm2 }
 0x2cc   :  { %v1087_v35 = vsub.f32 1.0, %v1086_v34 }
 0x2ce   :  { %v1088_v39 = vmul.f32 %v1310_v32, %v1087_v35 }
 0x2d0   :  { %v1089_v42 = vadd.f32 %v1310_v32, %v1088_v39 }
 0x2d2   :  { %v1093_v47 = vsel %vm1092_vm5, %v1310_v32, %v1089_v42 }
 0x2d3   :  { %v1098_v48 = vsel %vm1095_vm7, %v1097_v45, %v1093_v47 }
 0x2d4   :  { %v1102_v49 = vrot.slane %v1098_v48, 7 }
 0x2d6   :  { %v1104_v52 = vsel %vm1103_vm8, %v1083_v50, %v1102_v49 }
 0x2d7   :  { %1110 = vst.msk [vmem:[#allocation8] sm:$0x3] %vm1108_vm9, %v1104_v52 }
 0x2d8   :  { %1121 = dma.vmem_to_hbm [thread:$0]  %s1117_s22, 32, %s1119_s25, [#allocation5]  }
 0x2d9   :  { %1387 = dma.done.wait [#allocation5], 32  }
 0x2da   :  { %1388 = vsyncadd [#allocation5], 4294967264 }
 0x2db   :  { %1126 = vsyncpa [#allocation4], 1 }
 0x2dc   :  { %1127 = vsyncpa [#allocation7], 1 }
 0x2dd   :  { %1128 = vsyncpa [#allocation5], 1 }

</bundles_post_ra>
